<compile_context>
chip_gen: v6e
topology: v6e:2x2x1
jax: 0.10.0
libtpu: 0.0.40
codegen_flags: <defaults>
</compile_context>

<pallas_src>
import functools

import jax
import jax.numpy as jnp
from jax import lax
from jax.experimental import pallas as pl
from jax.experimental.pallas import tpu as pltpu


def _round_up(v, m):
    return ((v + m - 1) // m) * m


def _tpu_generation():
    """Best-effort TPU generation detection for tiling / VMEM decisions."""
    try:
        kind = jax.devices()[0].device_kind.lower()
    except Exception:
        return "other"
    if "v5 lite" in kind or "v5lite" in kind or "v5e" in kind:
        return "v5e"
    if "v6" in kind:
        return "v6e"
    if "v7" in kind:
        return "v7x"
    return "other"


def _spec(block_shape, index_map, buffers=None):
    """BlockSpec with optional multi-buffering; falls back if the kwarg is absent."""
    if buffers is None:
        return pl.BlockSpec(block_shape, index_map)
    try:
        return pl.BlockSpec(block_shape, index_map, pipeline_mode=pl.Buffered(buffers))
    except (TypeError, AttributeError):
        return pl.BlockSpec(block_shape, index_map)


def _predictor_deep_kernel(x_ref, w1_ref, b1_ref, w2_ref, o_ref, *, inv_temp):
    # fc1: (tb, inc)bf16 @ (inc, 512)bf16 -> f32 accumulation on the MXU, + bias.
    h = jnp.dot(x_ref[...], w1_ref[...], preferred_element_type=jnp.float32)
    h = h + b1_ref[...]                       # (1, 512) broadcast over rows

    # Fused F.normalize(dim=1, eps=1e-12) and /temp as a single per-row scale,
    # applied AFTER fc2:  (h/||h||) @ W2 / temp == (h @ W2) * r
    sumsq = jnp.sum(h * h, axis=-1, keepdims=True)            # (tb, 1) XLU reduce
    r = lax.rsqrt(jnp.maximum(sumsq, 1e-24)) * inv_temp       # EUP rsqrt

    # fc2 (no bias): cast the UNnormalized h to bf16 for a native-rate MXU matmul
    # with f32 accumulation, then apply the tiny (tb, nc_pad) per-row scale.
    out = jnp.dot(h.astype(w2_ref.dtype), w2_ref[...],
                  preferred_element_type=jnp.float32)
    o_ref[...] = (out * r).astype(o_ref.dtype)


def prepare_predictor_deep_weights(w1_t, b1, w2_t):
    """One-time, batch-independent weight preprocessing (hoisted out of the
    per-call path): bf16 casts, lane-dense zero-padding of W2, b1 reshape.

    w1_t: (inc, 512)        fc1.weight pre-transposed to (in, out)
    b1:   (512,)            fc1.bias
    w2_t: (512, num_class)  fc2.weight pre-transposed to (in, out)
    """
    hidden = w1_t.shape[1]
    num_class = w2_t.shape[1]
    nc_pad = max(128, 128 * pl.cdiv(num_class, 128))

    w1_bf = w1_t.astype(jnp.bfloat16)
    w2_bf = w2_t.astype(jnp.bfloat16)
    if nc_pad != num_class:
        w2_bf = jnp.pad(w2_bf, ((0, 0), (0, nc_pad - num_class)))
    b1_2d = b1.reshape(1, hidden).astype(jnp.float32)

    return {"w1": w1_bf, "b1": b1_2d, "w2": w2_bf, "num_class": num_class}


def predictor_deep_forward(x, params, *, temp=0.05, block_b=None):
    """Predictor_deep forward.

    x:      (B, inc) activations
    params: output of prepare_predictor_deep_weights()
    """
    w1_bf, b1_2d, w2_bf = params["w1"], params["b1"], params["w2"]
    num_class = params["num_class"]
    B, inc = x.shape
    hidden = w1_bf.shape[1]
    nc_pad = w2_bf.shape[1]

    gen = _tpu_generation()

    # --- Batch tile selection (generation aware). ---
    if block_b is None:
        target = 256 if gen == "v5e" else 512
        b16 = _round_up(max(B, 1), 16)
        if b16 <= target:
            if gen == "v7x" and b16 >= 256:
                # Keep >= 2 grid steps so the "parallel" axis feeds both TCs.
                block_b = _round_up(pl.cdiv(b16, 2), 16)
            else:
                block_b = b16           # small batch: no padding past 16 rows
        else:
            block_b = target
    assert block_b % 16 == 0, "block_b must be a multiple of 16 (bf16 sublane tile)"

    # --- bf16 activations (f32 accumulation happens inside the kernel). ---
    x_bf = x.astype(jnp.bfloat16)

    n_blocks = pl.cdiv(B, block_b)
    b_pad = n_blocks * block_b
    if b_pad != B:
        x_bf = jnp.pad(x_bf, ((0, b_pad - B), (0, 0)))

    # Deeper x-tile pipeline on v6e/v7x (near HBM roofline); default 2 elsewhere.
    x_bufs = 3 if gen in ("v6e", "v7x") else 2

    # --- Explicit VMEM budget: buffered x/out tiles + single-buffered weights.
    bytes_needed = (
        x_bufs * block_b * inc * 2       # x tile (bf16), Buffered(x_bufs)
        + 2 * block_b * nc_pad * 4       # out tile (f32), double-buffered
        + 1 * inc * hidden * 2           # W1 (grid-invariant, single-buffered)
        + 1 * hidden * nc_pad * 2        # W2
        + 1 * hidden * 4                 # b1
    )
    phys_cap = (56 << 20) if gen == "v7x" else (100 << 20)
    vmem_limit = int(min(max(bytes_needed * 3 // 2 + (2 << 20), 16 << 20), phys_cap))
    # TODO(synk): for inc >= ~12-16K on v7x (resident bf16 W1 approaching ~32-40 MiB),
    # add a K grid axis (reduction last, "arbitrary") with an f32 VMEM accumulator
    # instead of keeping W1 fully resident.

    kernel = functools.partial(_predictor_deep_kernel, inv_temp=1.0 / temp)

    out_padded = pl.pallas_call(
        kernel,
        out_shape=jax.ShapeDtypeStruct((b_pad, nc_pad), jnp.float32),
        grid=(n_blocks,),
        in_specs=[
            _spec((block_b, inc), lambda i: (i, 0),
                  buffers=x_bufs if x_bufs != 2 else None),       # x tile (streamed)
            _spec((inc, hidden), lambda i: (0, 0), buffers=1),    # W1^T (resident)
            _spec((1, hidden), lambda i: (0, 0), buffers=1),      # b1
            _spec((hidden, nc_pad), lambda i: (0, 0), buffers=1), # W2^T (resident)
        ],
        out_specs=pl.BlockSpec((block_b, nc_pad), lambda i: (i, 0)),
        compiler_params=pltpu.CompilerParams(
            dimension_semantics=("parallel",),   # batch axis shards across TCs
            vmem_limit_bytes=vmem_limit,
        ),
    )(x_bf, w1_bf, b1_2d, w2_bf)

    if b_pad == B and nc_pad == num_class:
        return out_padded
    return out_padded[:B, :num_class]


def reference_forward(x, w1_t, b1, w2_t, temp=0.05):
    """Pure-JAX f32 reference matching the PyTorch module semantics."""
    h = x @ w1_t + b1
    n = jnp.sqrt(jnp.sum(h * h, axis=-1, keepdims=True))
    h = h / jnp.maximum(n, 1e-12)
    return (h @ w2_t) / temp


if __name__ == "__main__":
    # Small, module-consistent shapes (hidden is fixed at 512 by Predictor_deep).
    B = 8          # batch
    INC = 256      # input features (module default 4096; shrunk for the demo)
    HIDDEN = 512   # fc1 output size (fixed in Predictor_deep)
    NUM_CLASS = 64
    TEMP = 0.05

    key = jax.random.PRNGKey(0)
    kx, kw1, kb1, kw2 = jax.random.split(key, 4)

    x = jax.random.normal(kx, (B, INC), dtype=jnp.float32)
    # Deterministic synthetic parameters (stored transposed: (in, out)).
    w1_t = jax.random.normal(kw1, (INC, HIDDEN), dtype=jnp.float32) * 0.02
    b1 = jax.random.normal(kb1, (HIDDEN,), dtype=jnp.float32) * 0.02
    w2_t = jax.random.normal(kw2, (HIDDEN, NUM_CLASS), dtype=jnp.float32) * 0.02

    # One-time weight preprocessing (hoisted out of the per-call path).
    params = prepare_predictor_deep_weights(w1_t, b1, w2_t)

    out = predictor_deep_forward(x, params, temp=TEMP)
    out = jax.block_until_ready(out)

    # Compare against an f32 reference applied to the same bf16-rounded operands
    # (the kernel's precision loss is the bf16 operand casts; accumulation is f32).
    x_r = x.astype(jnp.bfloat16).astype(jnp.float32)
    w1_r = w1_t.astype(jnp.bfloat16).astype(jnp.float32)
    w2_r = w2_t.astype(jnp.bfloat16).astype(jnp.float32)
    ref = reference_forward(x_r, w1_r, b1, w2_r, temp=TEMP)

    assert out.shape == (B, NUM_CLASS)
    assert jnp.allclose(out, ref, atol=3e-2, rtol=3e-2), "mismatch vs reference"

    print("KERNEL_OK")
</pallas_src>

<mosaic_0001>
module attributes {stable_mosaic.version = 11 : i64} {
  func.func @_predictor_deep_kernel(%arg0: i32, %arg1: memref<16x256xbf16, #tpu.memory_space<vmem>>, %arg2: memref<256x512xbf16, #tpu.memory_space<vmem>>, %arg3: memref<1x512xf32, #tpu.memory_space<vmem>>, %arg4: memref<512x128xbf16, #tpu.memory_space<vmem>>, %arg5: memref<16x128xf32, #tpu.memory_space<vmem>>) attributes {dimension_semantics = [#tpu.dimension_semantics<parallel>], iteration_bounds = array<i64: 1>, scalar_prefetch = 0 : i64, scratch_operands = 0 : i64, tpu.core_type = #tpu.core_type<tc>, window_params = [{transform_indices = @transform_0, window_bounds = array<i64: 16, 256>}, {pipeline_mode = #tpu.pipeline_mode<synchronous>, transform_indices = @transform_1, window_bounds = array<i64: 256, 512>}, {pipeline_mode = #tpu.pipeline_mode<synchronous>, transform_indices = @transform_2, window_bounds = array<i64: 1, 512>}, {pipeline_mode = #tpu.pipeline_mode<synchronous>, transform_indices = @transform_3, window_bounds = array<i64: 512, 128>}, {transform_indices = @transform_4, window_bounds = array<i64: 16, 128>}]} {
    %c0 = arith.constant 0 : index
    %c0_0 = arith.constant 0 : index
    %0 = vector.load %arg1[%c0, %c0_0] : memref<16x256xbf16, #tpu.memory_space<vmem>>, vector<16x256xbf16>
    %c0_1 = arith.constant 0 : index
    %c0_2 = arith.constant 0 : index
    %1 = vector.load %arg2[%c0_1, %c0_2] : memref<256x512xbf16, #tpu.memory_space<vmem>>, vector<256x512xbf16>
    %cst = arith.constant dense<0.000000e+00> : vector<16x512xf32>
    %2 = tpu.matmul %0, %1, %cst {dimension_numbers = #tpu.dot_dimension_numbers<[1], [0], [0], [1], [0, 0, 1, 1], [], []>} : vector<16x256xbf16>, vector<256x512xbf16>, vector<16x512xf32> -> vector<16x512xf32>
    %c0_3 = arith.constant 0 : index
    %c0_4 = arith.constant 0 : index
    %3 = vector.load %arg3[%c0_3, %c0_4] : memref<1x512xf32, #tpu.memory_space<vmem>>, vector<1x512xf32>
    %4 = vector.broadcast %3 : vector<1x512xf32> to vector<16x512xf32>
    %5 = arith.addf %2, %4 : vector<16x512xf32>
    %6 = arith.mulf %5, %5 : vector<16x512xf32>
    %cst_5 = arith.constant dense<0.000000e+00> : vector<16xf32>
    %7 = vector.multi_reduction <add>, %6, %cst_5 [1] : vector<16x512xf32> to vector<16xf32>
    %8 = vector.shape_cast %7 : vector<16xf32> to vector<16x1xf32>
    %cst_6 = arith.constant 1.000000e-24 : f32
    %9 = vector.broadcast %cst_6 : f32 to vector<16x1xf32>
    %10 = arith.maximumf %8, %9 : vector<16x1xf32>
    %11 = math.rsqrt %10 : vector<16x1xf32>
    %cst_7 = arith.constant 2.000000e+01 : f32
    %12 = vector.broadcast %cst_7 : f32 to vector<16x1xf32>
    %13 = arith.mulf %11, %12 : vector<16x1xf32>
    %14 = arith.truncf %5 : vector<16x512xf32> to vector<16x512xbf16>
    %c0_8 = arith.constant 0 : index
    %c0_9 = arith.constant 0 : index
    %15 = vector.load %arg4[%c0_8, %c0_9] : memref<512x128xbf16, #tpu.memory_space<vmem>>, vector<512x128xbf16>
    %cst_10 = arith.constant dense<0.000000e+00> : vector<16x128xf32>
    %16 = tpu.matmul %14, %15, %cst_10 {dimension_numbers = #tpu.dot_dimension_numbers<[1], [0], [0], [1], [0, 0, 1, 1], [], []>} : vector<16x512xbf16>, vector<512x128xbf16>, vector<16x128xf32> -> vector<16x128xf32>
    %17 = vector.broadcast %13 : vector<16x1xf32> to vector<16x128xf32>
    %18 = arith.mulf %16, %17 : vector<16x128xf32>
    %c0_11 = arith.constant 0 : index
    %c0_12 = arith.constant 0 : index
    %19 = vector.load %arg5[%c0_11, %c0_12] : memref<16x128xf32, #tpu.memory_space<vmem>>, vector<16x128xf32>
    tpu.vector_store %arg5[%c0_11, %c0_12], %18 {strides = array<i32>} : memref<16x128xf32, #tpu.memory_space<vmem>>, vector<16x128xf32>,
    return
  }
  func.func @transform_0(%arg0: i32) -> (i32, i32) {
    %c0_i32 = arith.constant 0 : i32
    %c0_i32_0 = arith.constant 0 : i32
    return %arg0, %c0_i32 : i32, i32
  }
  func.func @transform_1(%arg0: i32) -> (i32, i32) {
    %c0_i32 = arith.constant 0 : i32
    %c0_i32_0 = arith.constant 0 : i32
    %c0_i32_1 = arith.constant 0 : i32
    return %c0_i32, %c0_i32_0 : i32, i32
  }
  func.func @transform_2(%arg0: i32) -> (i32, i32) {
    %c0_i32 = arith.constant 0 : i32
    %c0_i32_0 = arith.constant 0 : i32
    %c0_i32_1 = arith.constant 0 : i32
    return %c0_i32, %c0_i32_0 : i32, i32
  }
  func.func @transform_3(%arg0: i32) -> (i32, i32) {
    %c0_i32 = arith.constant 0 : i32
    %c0_i32_0 = arith.constant 0 : i32
    %c0_i32_1 = arith.constant 0 : i32
    return %c0_i32, %c0_i32_0 : i32, i32
  }
  func.func @transform_4(%arg0: i32) -> (i32, i32) {
    %c0_i32 = arith.constant 0 : i32
    %c0_i32_0 = arith.constant 0 : i32
    return %arg0, %c0_i32 : i32, i32
  }
}

</mosaic_0001>

<bundles_post_ra>
// kernel: tpu_custom_call.1
= control target key start
LH: loop header
LB: loop body
LE: loop exit
PB: predicated region body
PF: predicated region fallthrough
CT: control target
= control target key end

     0   :  { %9 = vsyncpa [#allocation3], 0  ;;  %s1418_s0 = inlined_call_operand.hbm [shape: bf16[16,256], index: 0, kind: input, shape index: {}]   ;;  %s1419_s1 = inlined_call_operand.hbm [shape: bf16[256,512], index: 1, kind: input, shape index: {}]   ;;  %s1420_s2 = inlined_call_operand.hbm [shape: f32[1,512], index: 2, kind: input, shape index: {}]   ;;  %s1421_s3 = inlined_call_operand.hbm [shape: bf16[512,128], index: 3, kind: input, shape index: {}]   ;;  %s1422_s4 = inlined_call_operand.hbm [shape: f32[16,128], index: 4, kind: output, shape index: {}]  }
   0x1   :  { %10 = vsyncpa [#allocation6], 0 }
   0x2   :  { %11 = vsyncpa [#allocation9], 0 }
   0x3   :  { %12 = vsyncpa [#allocation4], 0  ;;  %s1361_s15 = smov [#allocation5]  }
   0x4   :  { %s30_s16 = sshll.u32 %s1361_s15, 4  ;;  %s31_s16 = int_to_ptr.vmem [resolvable:$true] %s30_s16 }
   0x5   :  { %s1261_s17 = scalar_lea.vmem %s31_s16, 8192  ;;  %p1266_p1 = scmp.lt.s32.totalorder %s31_s16, %s31_s16 }
   0x6   :  { %p1262_p0 = scmp.ne.s32.totalorder %s31_s16, %s1261_s17  ;;  %p1267_p2 = scmp.lt.s32.totalorder %s1261_s17, %s1261_s17 }
   0x8   :  { %p1268_p3 = por %p1267_p2, %p1266_p1 }
   0xa   :  { %p1269_p4 = pnand %p1268_p3, %p1262_p0 }
   0xc   :  { %1272 = shalt.err (!%p1269_p4)
}
   0xd   :  { %s1362_s18 = smov 256   ;;  %s1363_s19 = smov 16  }
   0xe   :  { %36 = dma.hbm_to_vmem [thread:$0]  %s1419_s1, 8192, %s31_s16, [#allocation6], %s1362_s18, %s1362_s18, %s1363_s19  }
   0xf   :  { %s1364_s22 = smov [#allocation2]  }
  0x10   :  { %s18_s23 = sshll.u32 %s1364_s22, 4  ;;  %s19_s23 = int_to_ptr.vmem [resolvable:$true] %s18_s23 }
  0x11   :  { %s1281_s24 = scalar_lea.vmem %s19_s23, 256  ;;  %p1286_p6 = scmp.lt.s32.totalorder %s19_s23, %s19_s23 }
  0x12   :  { %p1282_p5 = scmp.ne.s32.totalorder %s19_s23, %s1281_s24  ;;  %p1287_p7 = scmp.lt.s32.totalorder %s1281_s24, %s1281_s24 }
  0x14   :  { %p1288_p8 = por %p1287_p7, %p1286_p6 }
  0x16   :  { %p1289_p9 = pnand %p1288_p8, %p1282_p5 }
  0x18   :  { %1292 = shalt.err (!%p1289_p9)
}
  0x19   :  { %s1365_s25 = smov 128   ;;  %s1366_s26 = smov 8  }
  0x1a   :  { %24 = dma.hbm_to_vmem [thread:$0]  %s1418_s0, 256, %s19_s23, [#allocation3], %s1365_s25, %s1365_s25, %s1366_s26  }
  0x1b   :  { %s1367_s1 = smov [#allocation7]   ;;  %s1368_s30 = smov [#allocation8]  }
  0x1c   :  { %s43_s29 = sshll.u32 %s1367_s1, 4  ;;  %s52_s5 = sshll.u32 %s1368_s30, 4  ;;  %s44_s29 = int_to_ptr.vmem [resolvable:$true] %s43_s29  ;;  %s53_s5 = int_to_ptr.vmem [resolvable:$true] %s52_s5 }
  0x1d   :  { %s1301_s6 = scalar_lea.vmem %s44_s29, 64  ;;  %p1306_p11 = scmp.lt.s32.totalorder %s44_s29, %s44_s29 }
  0x1e   :  { %p1302_p10 = scmp.ne.s32.totalorder %s44_s29, %s1301_s6  ;;  %p1307_p12 = scmp.lt.s32.totalorder %s1301_s6, %s1301_s6 }
  0x20   :  { %p1308_p13 = por %p1307_p12, %p1306_p11 }
  0x22   :  { %p1309_p0 = pnand %p1308_p13, %p1302_p10 }
  0x24   :  { %1312 = shalt.err (!%p1309_p0)
}
  0x25   :  { %46 = dma.hbm_to_vmem [thread:$0]  %s1420_s2, 64, %s44_s29, [#allocation6]  }
  0x26   :  { %s1321_s9 = scalar_lea.vmem %s53_s5, 4096  ;;  %p1326_p2 = scmp.lt.s32.totalorder %s53_s5, %s53_s5 }
  0x27   :  { %p1322_p1 = scmp.ne.s32.totalorder %s53_s5, %s1321_s9  ;;  %p1327_p3 = scmp.lt.s32.totalorder %s1321_s9, %s1321_s9 }
  0x29   :  { %p1328_p4 = por %p1327_p3, %p1326_p2 }
  0x2b   :  { %p1329_p5 = pnand %p1328_p4, %p1322_p1 }
  0x2d   :  { %1332 = shalt.err (!%p1329_p5)
}
  0x2e   :  { %s1369_s0 = smov 64   ;;  %s1370_s10 = smov 4  }
  0x2f   :  { %58 = dma.hbm_to_vmem [thread:$0]  %s1421_s3, 4096, %s53_s5, [#allocation9], %s1369_s0, %s1369_s0, %s1370_s10  }
  0x30   :  { %1353 = dma.done.wait [#allocation3], 256  }
  0x31   :  { %1354 = vsyncadd [#allocation3], 4294967040 }
  0x32   :  { %1355 = dma.done.wait [#allocation6], 8256  }
  0x33   :  { %1356 = vsyncadd [#allocation6], 4294959040 }
  0x34   :  { %1357 = dma.done.wait [#allocation9], 4096  }
  0x35   :  { %1358 = vsyncadd [#allocation9], 4294963200  ;;  %v1118_v0 = vld [vmem:[#allocation5 + $0xe4] ss:$16 sps:$4 sm:$0xff]   ;;  %v1120_v1 = vld [vmem:[#allocation5 + $0xec] ss:$16 sps:$4 sm:$0xff]  }
  0x36   :  { %490 = vmatprep.subr.bf16.mxu0 %v1118_v0  ;;  %v1122_v2 = vld [vmem:[#allocation5 + $0xe0] ss:$16 sps:$4 sm:$0xff]   ;;  %v1123_v3 = vld [vmem:[#allocation5 + $0xe8] ss:$16 sps:$4 sm:$0xff]   ;;  %533 = vmatprep.subr.bf16.mxu1 %v1120_v1  ;;  %v1124_v4 = vld [vmem:[#allocation5 + $0xc4] ss:$16 sps:$4 sm:$0xff]  }
  0x37   :  { %491 = vmatpush1.bf16.msra.mxu0 %v1122_v2  ;;  %534 = vmatpush1.bf16.msra.mxu1 %v1123_v3  ;;  %v1126_v5 = vld [vmem:[#allocation5 + $0xcc] ss:$16 sps:$4 sm:$0xff]   ;;  %v1128_v6 = vld [vmem:[#allocation5 + $0xc0] ss:$16 sps:$4 sm:$0xff]   ;;  %v1129_v7 = vld [vmem:[#allocation5 + $0xc8] ss:$16 sps:$4 sm:$0xff]  }
  0x38   :  { %492 = vmatprep.subr.bf16.mxu0 %v1124_v4  ;;  %535 = vmatprep.subr.bf16.mxu1 %v1126_v5  ;;  %v1130_v8 = vld [vmem:[#allocation5 + $0xa4] ss:$16 sps:$4 sm:$0xff]   ;;  %v1132_v9 = vld [vmem:[#allocation5 + $0xac] ss:$16 sps:$4 sm:$0xff]   ;;  %v1134_v10 = vld [vmem:[#allocation5 + $0xa0] ss:$16 sps:$4 sm:$0xff]  }
  0x39   :  { %v1135_v11 = vld [vmem:[#allocation5 + $0xa8] ss:$16 sps:$4 sm:$0xff]   ;;  %v1136_v12 = vld [vmem:[#allocation5 + $0x84] ss:$16 sps:$4 sm:$0xff]   ;;  %v1138_v13 = vld [vmem:[#allocation5 + $0x8c] ss:$16 sps:$4 sm:$0xff]  }
  0x3a   :  { %v1140_v14 = vld [vmem:[#allocation5 + $0x80] ss:$16 sps:$4 sm:$0xff]   ;;  %v1141_v15 = vld [vmem:[#allocation5 + $0x88] ss:$16 sps:$4 sm:$0xff]   ;;  %v1142_v16 = vld [vmem:[#allocation5 + $0x64] ss:$16 sps:$4 sm:$0xff]  }
  0x3b   :  { %493 = vmatpush1.bf16.msra.mxu0 %v1128_v6  ;;  %536 = vmatpush1.bf16.msra.mxu1 %v1129_v7  ;;  %v1144_v17 = vld [vmem:[#allocation5 + $0x6c] ss:$16 sps:$4 sm:$0xff]   ;;  %v1146_v18 = vld [vmem:[#allocation5 + $0x60] ss:$16 sps:$4 sm:$0xff]   ;;  %v1147_v19 = vld [vmem:[#allocation5 + $0x68] ss:$16 sps:$4 sm:$0xff]  }
  0x3c   :  { %494 = vmatprep.subr.bf16.mxu0 %v1130_v8  ;;  %537 = vmatprep.subr.bf16.mxu1 %v1132_v9  ;;  %v1148_v20 = vld [vmem:[#allocation5 + $0x44] ss:$16 sps:$4 sm:$0xff]   ;;  %v1150_v21 = vld [vmem:[#allocation5 + $0x4c] ss:$16 sps:$4 sm:$0xff]   ;;  %v1152_v22 = vld [vmem:[#allocation5 + $0x40] ss:$16 sps:$4 sm:$0xff]  }
  0x3d   :  { %v1153_v23 = vld [vmem:[#allocation5 + $0x48] ss:$16 sps:$4 sm:$0xff]   ;;  %v1154_v24 = vld [vmem:[#allocation5 + $0x24] ss:$16 sps:$4 sm:$0xff]   ;;  %v1156_v25 = vld [vmem:[#allocation5 + $0x2c] ss:$16 sps:$4 sm:$0xff]  }
  0x3e   :  { %v1158_v26 = vld [vmem:[#allocation5 + $0x20] ss:$16 sps:$4 sm:$0xff]   ;;  %v1159_v27 = vld [vmem:[#allocation5 + $0x28] ss:$16 sps:$4 sm:$0xff]   ;;  %v1160_v28 = vld [vmem:[#allocation5 + $0x4] ss:$16 sps:$4 sm:$0xff]  }
  0x3f   :  { %495 = vmatpush1.bf16.msra.mxu0 %v1134_v10  ;;  %538 = vmatpush1.bf16.msra.mxu1 %v1135_v11  ;;  %v1162_v29 = vld [vmem:[#allocation5 + $0xc] ss:$16 sps:$4 sm:$0xff]   ;;  %v1164_v30 = vld [vmem:[#allocation5] ss:$16 sps:$4 sm:$0xff]   ;;  %v1165_v31 = vld [vmem:[#allocation5 + $0x8] ss:$16 sps:$4 sm:$0xff]  }
  0x40   :  { %496 = vmatprep.subr.bf16.mxu0 %v1136_v12  ;;  %539 = vmatprep.subr.bf16.mxu1 %v1138_v13  ;;  %v1166_v32 = vld [vmem:[#allocation5 + $0x1e4] ss:$16 sps:$4 sm:$0xff]   ;;  %v1168_v33 = vld [vmem:[#allocation5 + $0x1ec] ss:$16 sps:$4 sm:$0xff]   ;;  %v1170_v34 = vld [vmem:[#allocation5 + $0x1e0] ss:$16 sps:$4 sm:$0xff]  }
  0x41   :  { %v1171_v35 = vld [vmem:[#allocation5 + $0x1e8] ss:$16 sps:$4 sm:$0xff]   ;;  %v1172_v36 = vld [vmem:[#allocation5 + $0x1c4] ss:$16 sps:$4 sm:$0xff]   ;;  %v1174_v37 = vld [vmem:[#allocation5 + $0x1cc] ss:$16 sps:$4 sm:$0xff]  }
  0x42   :  { %v1176_v38 = vld [vmem:[#allocation5 + $0x1c0] ss:$16 sps:$4 sm:$0xff]   ;;  %v1177_v39 = vld [vmem:[#allocation5 + $0x1c8] ss:$16 sps:$4 sm:$0xff]   ;;  %v1178_v40 = vld [vmem:[#allocation5 + $0x1a4] ss:$16 sps:$4 sm:$0xff]  }
  0x43   :  { %497 = vmatpush1.bf16.msra.mxu0 %v1140_v14  ;;  %540 = vmatpush1.bf16.msra.mxu1 %v1141_v15  ;;  %v1180_v41 = vld [vmem:[#allocation5 + $0x1ac] ss:$16 sps:$4 sm:$0xff]   ;;  %v1182_v42 = vld [vmem:[#allocation5 + $0x1a0] ss:$16 sps:$4 sm:$0xff]   ;;  %v1183_v43 = vld [vmem:[#allocation5 + $0x1a8] ss:$16 sps:$4 sm:$0xff]  }
  0x44   :  { %498 = vmatprep.subr.bf16.mxu0 %v1142_v16  ;;  %541 = vmatprep.subr.bf16.mxu1 %v1144_v17  ;;  %v1184_v44 = vld [vmem:[#allocation5 + $0x184] ss:$16 sps:$4 sm:$0xff]   ;;  %v1186_v45 = vld [vmem:[#allocation5 + $0x18c] ss:$16 sps:$4 sm:$0xff]   ;;  %v1188_v46 = vld [vmem:[#allocation5 + $0x180] ss:$16 sps:$4 sm:$0xff]  }
  0x45   :  { %v1189_v47 = vld [vmem:[#allocation5 + $0x188] ss:$16 sps:$4 sm:$0xff]   ;;  %v1216_v48 = vld [vmem:[#allocation2 + $0x4] ss:$8 sps:$4 sm:$0xff]   ;;  %v1194_v51 = vld [vmem:[#allocation5 + $0x160] ss:$16 sps:$4 sm:$0xff]  }
  0x46   :  { %v1190_v49 = vld [vmem:[#allocation5 + $0x164] ss:$16 sps:$4 sm:$0xff]   ;;  %v1192_v50 = vld [vmem:[#allocation5 + $0x16c] ss:$16 sps:$4 sm:$0xff]   ;;  %522 = vmatprep.mubr.bf16.mxu0 %v1216_v48  ;;  %565 = vmatprep.mubr.bf16.mxu1 %v1216_v48  ;;  %v1195_v52 = vld [vmem:[#allocation5 + $0x168] ss:$16 sps:$4 sm:$0xff]  }
  0x47   :  { %499 = vmatpush1.bf16.msra.mxu0 %v1146_v18  ;;  %542 = vmatpush1.bf16.msra.mxu1 %v1147_v19  ;;  %v1196_v53 = vld [vmem:[#allocation5 + $0x144] ss:$16 sps:$4 sm:$0xff]   ;;  %v1198_v54 = vld [vmem:[#allocation5 + $0x14c] ss:$16 sps:$4 sm:$0xff]   ;;  %v1200_v55 = vld [vmem:[#allocation5 + $0x140] ss:$16 sps:$4 sm:$0xff]  }
  0x48   :  { %500 = vmatprep.subr.bf16.mxu0 %v1148_v20  ;;  %543 = vmatprep.subr.bf16.mxu1 %v1150_v21  ;;  %v1201_v56 = vld [vmem:[#allocation5 + $0x148] ss:$16 sps:$4 sm:$0xff]   ;;  %v1202_v57 = vld [vmem:[#allocation5 + $0x124] ss:$16 sps:$4 sm:$0xff]   ;;  %v1204_v58 = vld [vmem:[#allocation5 + $0x12c] ss:$16 sps:$4 sm:$0xff]  }
  0x49   :  { %v1206_v59 = vld [vmem:[#allocation5 + $0x120] ss:$16 sps:$4 sm:$0xff]   ;;  %v1207_v60 = vld [vmem:[#allocation5 + $0x128] ss:$16 sps:$4 sm:$0xff]   ;;  %v1208_v61 = vld [vmem:[#allocation5 + $0x104] ss:$16 sps:$4 sm:$0xff]  }
  0x4a   :  { %v1210_v62 = vld [vmem:[#allocation5 + $0x10c] ss:$16 sps:$4 sm:$0xff]   ;;  %v1212_v63 = vld [vmem:[#allocation5 + $0x100] ss:$16 sps:$4 sm:$0xff]   ;;  %v1213_v0 = vld [vmem:[#allocation5 + $0x108] ss:$16 sps:$4 sm:$0xff]  }
  0x4b   :  { %501 = vmatpush1.bf16.msra.mxu0 %v1152_v22  ;;  %544 = vmatpush1.bf16.msra.mxu1 %v1153_v23  ;;  %v1217_v1 = vld [vmem:[#allocation8 + $0x78] sm:$0xff]   ;;  %v1214_v2 = vld [vmem:[#allocation2] ss:$8 sps:$4 sm:$0xff]   ;;  %v1229_v14 = vld [vmem:[#allocation8 + $0x60] sm:$0xff]   ;;  %s1371_s2 = smov [#allocation10]  }
  0x4c   :  { %502 = vmatprep.subr.bf16.mxu0 %v1154_v24  ;;  %545 = vmatprep.subr.bf16.mxu1 %v1156_v25  ;;  %v1218_v3 = vld [vmem:[#allocation8 + $0xf8] sm:$0xff]   ;;  %v1221_v6 = vld [vmem:[#allocation8 + $0x70] sm:$0xff]   ;;  %v1225_v10 = vld [vmem:[#allocation8 + $0x68] sm:$0xff]   ;;  %s951_s3 = sshll.u32 %s1371_s2, 4  ;;  %s952_s3 = int_to_ptr.vmem [resolvable:$true] %s951_s3 }
  0x4d   :  { %v1219_v4 = vld [vmem:[#allocation8 + $0x38] sm:$0xff]   ;;  %v1222_v7 = vld [vmem:[#allocation8 + $0xf0] sm:$0xff]   ;;  %v1226_v11 = vld [vmem:[#allocation8 + $0xe8] sm:$0xff]   ;;  %s1333_s13 = scalar_lea.vmem %s952_s3, 256  ;;  %p1338_p7 = scmp.lt.s32.totalorder %s952_s3, %s952_s3 }
  0x4e   :  { %v1220_v5 = vld [vmem:[#allocation8 + $0xb8] sm:$0xff]   ;;  %v1223_v8 = vld [vmem:[#allocation8 + $0x30] sm:$0xff]   ;;  %v1227_v12 = vld [vmem:[#allocation8 + $0x28] sm:$0xff]   ;;  %p1334_p6 = scmp.ne.s32.totalorder %s952_s3, %s1333_s13  ;;  %p1339_p8 = scmp.lt.s32.totalorder %s1333_s13, %s1333_s13 }
  0x4f   :  { %503 = vmatpush1.bf16.msra.mxu0 %v1158_v26  ;;  %546 = vmatpush1.bf16.msra.mxu1 %v1159_v27  ;;  %v1224_v9 = vld [vmem:[#allocation8 + $0xb0] sm:$0xff]   ;;  %v1228_v13 = vld [vmem:[#allocation8 + $0xa8] sm:$0xff]   ;;  %v1230_v15 = vld [vmem:[#allocation8 + $0xe0] sm:$0xff]  }
  0x50   :  { %504 = vmatprep.subr.bf16.mxu0 %v1160_v28  ;;  %547 = vmatprep.subr.bf16.mxu1 %v1162_v29  ;;  %v1231_v16 = vld [vmem:[#allocation8 + $0x20] sm:$0xff]   ;;  %v1233_v18 = vld [vmem:[#allocation8 + $0x58] sm:$0xff]   ;;  %v1237_v22 = vld [vmem:[#allocation8 + $0x50] sm:$0xff]   ;;  %p1340_p9 = por %p1339_p8, %p1338_p7 }
  0x51   :  { %v1232_v17 = vld [vmem:[#allocation8 + $0xa0] sm:$0xff]   ;;  %v1234_v19 = vld [vmem:[#allocation8 + $0xd8] sm:$0xff]   ;;  %v1238_v23 = vld [vmem:[#allocation8 + $0xd0] sm:$0xff]  }
  0x52   :  { %v1235_v20 = vld [vmem:[#allocation8 + $0x18] sm:$0xff]   ;;  %v1239_v24 = vld [vmem:[#allocation8 + $0x10] sm:$0xff]   ;;  %v1241_v26 = vld [vmem:[#allocation8 + $0x48] sm:$0xff]   ;;  %p1341_p10 = pnand %p1340_p9, %p1334_p6 }
  0x53   :  { %505 = vmatpush1.bf16.msra.mxu0 %v1164_v30  ;;  %548 = vmatpush1.bf16.msra.mxu1 %v1165_v31  ;;  %v1236_v21 = vld [vmem:[#allocation8 + $0x98] sm:$0xff]   ;;  %v1240_v25 = vld [vmem:[#allocation8 + $0x90] sm:$0xff]   ;;  %v1242_v27 = vld [vmem:[#allocation8 + $0xc8] sm:$0xff]  }
  0x54   :  { %506 = vmatprep.subr.bf16.mxu0 %v1166_v32  ;;  %549 = vmatprep.subr.bf16.mxu1 %v1168_v33  ;;  %v1243_v28 = vld [vmem:[#allocation8 + $0x8] sm:$0xff]   ;;  %v1245_v30 = vld [vmem:[#allocation8 + $0x40] sm:$0xff]  }
  0x55   :  { %v1244_v29 = vld [vmem:[#allocation8 + $0x88] sm:$0xff]   ;;  %v1246_v31 = vld [vmem:[#allocation8 + $0xc0] sm:$0xff]  }
  0x56   :  { %v1247_v32 = vld [vmem:[#allocation8] sm:$0xff]  }
  0x57   :  { %507 = vmatpush2.bf16.msra.mxu0 %v1170_v34  ;;  %550 = vmatpush2.bf16.msra.mxu1 %v1171_v35  ;;  %v1248_v33 = vld [vmem:[#allocation8 + $0x80] sm:$0xff]   ;;  %v140_v34 = vlaneseq }
  0x58   :  { %508 = vmatprep.subr.bf16.mxu0 %v1172_v36  ;;  %551 = vmatprep.subr.bf16.mxu1 %v1174_v37  ;;  %v138_v37 = vld [vmem:[#allocation7] sm:$0xf] }
  0x59   :  { %v141_v35 = vshrl.u32 %v140_v34, 7 }
  0x5b   :  { %509 = vmatpush2.bf16.msra.mxu0 %v1176_v38  ;;  %552 = vmatpush2.bf16.msra.mxu1 %v1177_v39  ;;  %v142_v36 = vsub.s32 0, %v141_v35  ;;  %v146_v38 = vsub.s32 1, %v141_v35  ;;  %v150_v39 = vsub.s32 2, %v141_v35 }
  0x5c   :  { %510 = vmatprep.subr.bf16.mxu0 %v1178_v40  ;;  %553 = vmatprep.subr.bf16.mxu1 %v1180_v41 }
  0x5d   :  { %v143_v40 = vrot.slane %v138_v37, %v142_v36  ;;  %v147_v41 = vrot.slane %v138_v37, %v146_v38 }
  0x5f   :  { %511 = vmatpush2.bf16.msra.mxu0 %v1182_v42  ;;  %554 = vmatpush2.bf16.msra.mxu1 %v1183_v43  ;;  %v154_v42 = vsub.s32 3, %v141_v35 }
  0x60   :  { %512 = vmatprep.subr.bf16.mxu0 %v1184_v44  ;;  %555 = vmatprep.subr.bf16.mxu1 %v1186_v45  ;;  %v151_v45 = vrot.slane %v138_v37, %v150_v39 }
  0x63   :  { %513 = vmatpush2.bf16.msra.mxu0 %v1188_v46  ;;  %556 = vmatpush2.bf16.msra.mxu1 %v1189_v47 }
  0x64   :  { %514 = vmatprep.subr.bf16.mxu0 %v1190_v49  ;;  %557 = vmatprep.subr.bf16.mxu1 %v1192_v50  ;;  %v155_v50 = vrot.slane %v138_v37, %v154_v42 }
  0x67   :  { %515 = vmatpush2.bf16.msra.mxu0 %v1194_v51  ;;  %558 = vmatpush2.bf16.msra.mxu1 %v1195_v52 }
  0x68   :  { %516 = vmatprep.subr.bf16.mxu0 %v1196_v53  ;;  %559 = vmatprep.subr.bf16.mxu1 %v1198_v54 }
  0x6b   :  { %517 = vmatpush2.bf16.msra.mxu0 %v1200_v55  ;;  %560 = vmatpush2.bf16.msra.mxu1 %v1201_v56 }
  0x6c   :  { %518 = vmatprep.subr.bf16.mxu0 %v1202_v57  ;;  %561 = vmatprep.subr.bf16.mxu1 %v1204_v58 }
  0x6f   :  { %519 = vmatpush2.bf16.msra.mxu0 %v1206_v59  ;;  %562 = vmatpush2.bf16.msra.mxu1 %v1207_v60 }
  0x70   :  { %520 = vmatprep.subr.bf16.mxu0 %v1208_v61  ;;  %563 = vmatprep.subr.bf16.mxu1 %v1210_v62 }
  0x73   :  { %521 = vmatpush2.bf16.msra.mxu0 %v1212_v63  ;;  %564 = vmatpush2.bf16.msra.mxu1 %v1213_v0 }
  0x74   :  { %1063 = vmatprep.subr.bf16.mxu0 %v1217_v1  ;;  %1085 = vmatprep.subr.bf16.mxu1 %v1218_v3 }
  0x76   :  { %523 = vmatmul.mubr.bf16.vlgmr.msra.gmra.mxu0 %v1214_v2  ;;  %566 = vmatmul.mubr.bf16.vlgmr.msra.gmra.mxu1 %v1214_v2 }
  0x77   :  { %1064 = vmatpush3.bf16.msra.mxu0 %v1219_v4  ;;  %1086 = vmatpush3.bf16.msra.mxu1 %v1220_v5 }
  0x78   :  { %1065 = vmatprep.subr.bf16.mxu0 %v1221_v6  ;;  %1087 = vmatprep.subr.bf16.mxu1 %v1222_v7 }
  0x7b   :  { %1066 = vmatpush3.bf16.msra.mxu0 %v1223_v8  ;;  %1088 = vmatpush3.bf16.msra.mxu1 %v1224_v9 }
  0x7c   :  { %1067 = vmatprep.subr.bf16.mxu0 %v1225_v10  ;;  %1089 = vmatprep.subr.bf16.mxu1 %v1226_v11 }
  0x7f   :  { %1068 = vmatpush3.bf16.msra.mxu0 %v1227_v12  ;;  %1090 = vmatpush3.bf16.msra.mxu1 %v1228_v13 }
  0x80   :  { %1069 = vmatprep.subr.bf16.mxu0 %v1229_v14  ;;  %1091 = vmatprep.subr.bf16.mxu1 %v1230_v15 }
  0x83   :  { %1070 = vmatpush3.bf16.msra.mxu0 %v1231_v16  ;;  %1092 = vmatpush3.bf16.msra.mxu1 %v1232_v17 }
  0x84   :  { %1071 = vmatprep.subr.bf16.mxu0 %v1233_v18  ;;  %1093 = vmatprep.subr.bf16.mxu1 %v1234_v19 }
  0x87   :  { %1072 = vmatpush3.bf16.msra.mxu0 %v1235_v20  ;;  %1094 = vmatpush3.bf16.msra.mxu1 %v1236_v21 }
  0x88   :  { %1073 = vmatprep.subr.bf16.mxu0 %v1237_v22  ;;  %1095 = vmatprep.subr.bf16.mxu1 %v1238_v23 }
  0x8b   :  { %1074 = vmatpush3.bf16.msra.mxu0 %v1239_v24  ;;  %1096 = vmatpush3.bf16.msra.mxu1 %v1240_v25 }
  0x8c   :  { %1075 = vmatprep.subr.bf16.mxu0 %v1241_v26  ;;  %1097 = vmatprep.subr.bf16.mxu1 %v1242_v27 }
  0x8f   :  { %1076 = vmatpush3.bf16.msra.mxu0 %v1243_v28  ;;  %1098 = vmatpush3.bf16.msra.mxu1 %v1244_v29 }
  0x90   :  { %1077 = vmatprep.subr.bf16.mxu0 %v1245_v30  ;;  %1099 = vmatprep.subr.bf16.mxu1 %v1246_v31 }
  0x93   :  { %1078 = vmatpush3.bf16.msra.mxu0 %v1247_v32  ;;  %1100 = vmatpush3.bf16.msra.mxu1 %v1248_v33 }
 0x136   :  { %v524_v43 = vpop.f32.mrf.mxu0  ;;  %v567_v44 = vpop.f32.mrf.mxu1 }
 0x137   :  { %v525_v46 = vadd.f32 %v524_v43, %v143_v40  ;;  %v568_v53 = vadd.f32 %v567_v44, %v151_v45 }
 0x138   :  { %v526_v47 = vpop.f32.mrf.mxu0  ;;  %v569_v48 = vpop.f32.mrf.mxu1 }
 0x139   :  { %v527_v49 = vadd.f32 %v526_v47, %v147_v41  ;;  %v576_v55 = vmul.f32 %v525_v46, %v525_v46  ;;  %v570_v59 = vadd.f32 %v569_v48, %v155_v50  ;;  %v578_v0 = vmul.f32 %v568_v53, %v568_v53 }
 0x13a   :  { %v528_v51 = vpop.f32.mrf.mxu0  ;;  %v571_v52 = vpop.f32.mrf.mxu1 }
 0x13b   :  { %v577_v54 = vmul.f32 %v527_v49, %v527_v49  ;;  %v529_v56 = vadd.f32 %v528_v51, %v143_v40  ;;  %v572_v60 = vadd.f32 %v571_v52, %v151_v45  ;;  %v579_v7 = vmul.f32 %v570_v59, %v570_v59 }
 0x13c   :  { %v530_v57 = vpop.f32.mrf.mxu0  ;;  %v573_v58 = vpop.f32.mrf.mxu1 }
 0x13d   :  { %v531_v61 = vadd.f32 %v530_v57, %v147_v41  ;;  %v574_v62 = vadd.f32 %v573_v58, %v155_v50  ;;  %v584_v63 = vadd.f32 %v577_v54, %v576_v55  ;;  %v580_v1 = vmul.f32 %v529_v56, %v529_v56 }
 0x13e   :  { %v600_v5 = vpack.c.bf16 %v529_v56, %v525_v46  ;;  %v602_v6 = vpack.c.bf16 %v572_v60, %v568_v53  ;;  %v582_v9 = vmul.f32 %v572_v60, %v572_v60 }
 0x13f   :  { %v581_v2 = vmul.f32 %v531_v61, %v531_v61  ;;  %v601_v3 = vpack.c.bf16 %v531_v61, %v527_v49  ;;  %v603_v4 = vpack.c.bf16 %v574_v62, %v570_v59  ;;  %v585_v8 = vadd.f32 %v584_v63, %v578_v0 }
 0x140   :  { %v583_v12 = vmul.f32 %v574_v62, %v574_v62 }
 0x141   :  { %v589_v10 = vadd.f32 %v581_v2, %v580_v1  ;;  %892 = vmatprep.mubr.bf16.mxu0 %v601_v3  ;;  %933 = vmatprep.mubr.bf16.mxu1 %v603_v4  ;;  %v586_v11 = vadd.f32 %v585_v8, %v579_v7 }
 0x142   :  { %893 = vmatmul.mubr.bf16.vlgmr.msra.gmra.mxu0 %v600_v5  ;;  %934 = vmatmul.mubr.bf16.vlgmr.msra.gmra.mxu1 %v602_v6 }
 0x143   :  { %v590_v13 = vadd.f32 %v589_v10, %v582_v9  ;;  %587 = vadd.xlane.f32.xlu0 %v586_v11 }
 0x145   :  { %v591_v14 = vadd.f32 %v590_v13, %v583_v12 }
 0x147   :  { %592 = vadd.xlane.f32.xlu0 %v591_v14 }
 0x1cc   :  { %v588_v15 = vpop.xlane.xlu0 %587 }
 0x1cd   :  { %v594_v16 = vmax.f32 %v588_v15, 1e-24 }
 0x1cf   :  { %1249 = vrsqrt.f32 %v594_v16 }
 0x1d0   :  { %v593_v17 = vpop.xlane.xlu0 %592 }
 0x1d1   :  { %v595_v18 = vmax.f32 %v593_v17, 1e-24 }
 0x1d3   :  { %1251 = vrsqrt.f32 %v595_v18 }
 0x1dc   :  { %v1250_v21 = vpop.eup %1249 }
 0x1dd   :  { %v598_v28 = vmul.f32 20.0, %v1250_v21 }
 0x1e0   :  { %v1252_v30 = vpop.eup %1251 }
 0x1e1   :  { %v599_v36 = vmul.f32 20.0, %v1252_v30 }
 0x202   :  { %v1079_v19 = vpop.f32.mrf.mxu0  ;;  %v1101_v20 = vpop.f32.mrf.mxu1 }
 0x204   :  { %v1080_v22 = vpop.f32.mrf.mxu0  ;;  %v1102_v23 = vpop.f32.mrf.mxu1 }
 0x205   :  { %v1081_v24 = vadd.f32 %v1080_v22, %v1079_v19  ;;  %v1103_v25 = vadd.f32 %v1102_v23, %v1101_v20 }
 0x206   :  { %v1082_v26 = vpop.f32.mrf.mxu0  ;;  %v1104_v27 = vpop.f32.mrf.mxu1 }
 0x207   :  { %v936_v29 = vadd.f32 %v1103_v25, %v1081_v24 }
 0x208   :  { %v1083_v31 = vpop.f32.mrf.mxu0  ;;  %v1105_v32 = vpop.f32.mrf.mxu1 }
 0x209   :  { %v942_v33 = vmul.f32 %v936_v29, %v598_v28  ;;  %v1084_v34 = vadd.f32 %v1083_v31, %v1082_v26  ;;  %v1106_v35 = vadd.f32 %v1105_v32, %v1104_v27 }
 0x20b   :  { %944 = vst [vmem:[#allocation10] sm:$0xff] %v942_v33  ;;  %v939_v37 = vadd.f32 %v1106_v35, %v1084_v34 }
 0x20d   :  { %v943_v38 = vmul.f32 %v939_v37, %v599_v36 }
 0x20f   :  { %945 = vst [vmem:[#allocation10 + $0x8] sm:$0xff] %v943_v38 }
 0x210   :  { %1344 = shalt.err (!%p1341_p10)
}
 0x211   :  { %957 = dma.vmem_to_hbm [thread:$0]  %s952_s3, 256, %s1422_s4, [#allocation4], %s1365_s25, %s1365_s25, %s1366_s26  }
 0x212   :  { %1359 = dma.done.wait [#allocation4], 256  }
 0x213   :  { %1360 = vsyncadd [#allocation4], 4294967040 }
 0x214   :  { %961 = vsyncpa [#allocation3], 1 }
 0x215   :  { %962 = vsyncpa [#allocation6], 1 }
 0x216   :  { %963 = vsyncpa [#allocation9], 1 }
 0x217   :  { %964 = vsyncpa [#allocation4], 1 }

</bundles_post_ra>
